<compile_context>
chip_gen: v7x
topology: tpu7x:2x2x1
jax: 0.10.0
libtpu: 0.0.40
codegen_flags: <defaults>
</compile_context>

<pallas_src>
import functools

import jax
import jax.numpy as jnp
from jax.experimental import pallas as pl
from jax.experimental.pallas import tpu as pltpu


def _round_up(x, m):
    return (x + m - 1) // m * m


def _cdiv(a, b):
    return (a + b - 1) // b


# ---------------------------------------------------------------------------
# GELU variants.
# ---------------------------------------------------------------------------
_ERF_ALPHA = (0.00022905065861350646, 0.0034082910107109506,
              0.050955695062380861, 0.18520832239976145, 1.128379143519084)
_ERF_BETA = (-1.1791602954361697e-7, 0.000023547966471313185,
             0.0010179625278914885, 0.014070470171167667,
             0.11098505178285362, 0.49746925110067538, 1.0)


def _poly(x, coeffs):
    acc = jnp.full_like(x, coeffs[0])
    for c in coeffs[1:]:
        acc = acc * x + c
    return acc


def _gelu_exact(x):
    # GELU(x) = 0.5 * x * (1 + erf(x / sqrt(2))); erf via f32 rational approx,
    # divide routed through the EUP (approximate reciprocal, ~1e-4 rel error).
    z = jnp.clip(x * 0.7071067811865476, -4.0, 4.0)
    z2 = z * z
    erf = z * _poly(z2, _ERF_ALPHA) * pl.reciprocal(_poly(z2, _ERF_BETA),
                                                    approx=True)
    return 0.5 * x * (1.0 + erf)


def _gelu_tanh(x):
    # tanh-form GELU: the transcendental goes to the EUP slot instead of
    # ~20 f32 VALU ops/element of the (row_tile, hidden) tensor.
    c = 0.7978845608028654  # sqrt(2/pi)
    return 0.5 * x * (1.0 + jnp.tanh(c * (x + 0.044715 * x * x * x)))


# ---------------------------------------------------------------------------
# Kernel: one row tile x one hidden tile.
#   hk == 0     : LayerNorm -> bf16 scratch, zero the f32 accumulator
#   every hk    : acc += GELU(y @ W1[:, hk] + b1[hk]) @ W2[hk, :]
#   hk == last  : out = x + acc + b2
# Feature axes are zero-padded to multiples of 128; padded lanes of x, gamma,
# beta, b1, b2 and the padded rows/cols of W1/W2 are zero, so all math below
# is exact on the real features with no masking.
# ---------------------------------------------------------------------------
def block_kernel(x_ref, gamma_ref, beta_ref, w1_ref, b1_ref, w2_ref, b2_ref,
                 o_ref, y_ref, acc_ref, *, inv_dim, use_tanh_gelu):
    hk = pl.program_id(1)

    @pl.when(hk == 0)
    def _():
        x = x_ref[...].astype(jnp.float32)                    # (TM, Dp)
        mean = jnp.sum(x, axis=-1, keepdims=True) * inv_dim
        ex2 = jnp.sum(x * x, axis=-1, keepdims=True) * inv_dim
        var = ex2 - mean * mean                               # E[x^2]-mean^2
        y = (x - mean) * jax.lax.rsqrt(var + 1e-5)
        y = y * gamma_ref[...] + beta_ref[...]                # padded lanes -> 0
        y_ref[...] = y.astype(jnp.bfloat16)
        acc_ref[...] = jnp.zeros_like(acc_ref)

    # MLP slice for this hidden tile: bf16 MXU inputs, f32 accumulation.
    h = jnp.dot(y_ref[...], w1_ref[...], preferred_element_type=jnp.float32)
    h = h + b1_ref[...]                                       # (TM, TH), f32
    h = _gelu_tanh(h) if use_tanh_gelu else _gelu_exact(h)
    acc_ref[...] += jnp.dot(h.astype(jnp.bfloat16), w2_ref[...],
                            preferred_element_type=jnp.float32)

    @pl.when(hk == pl.num_programs(1) - 1)
    def _():
        out = x_ref[...].astype(jnp.float32) + acc_ref[...] + b2_ref[...]
        o_ref[...] = out.astype(o_ref.dtype)


# ---------------------------------------------------------------------------
# One-time parameter preparation (hoisted out of the per-call path).
# ---------------------------------------------------------------------------
def prepare_block_params(gamma, beta, w1, b1, w2, b2):
    """Pad feature axes to multiples of 128 and cast weights to bf16 once."""
    dim, hidden = w1.shape
    dim_p, hidden_p = _round_up(dim, 128), _round_up(hidden, 128)
    f32, bf16 = jnp.float32, jnp.bfloat16
    return dict(
        dim=dim, hidden=hidden, dim_p=dim_p, hidden_p=hidden_p,
        gamma=jnp.zeros((1, dim_p), f32).at[0, :dim].set(gamma.astype(f32)),
        beta=jnp.zeros((1, dim_p), f32).at[0, :dim].set(beta.astype(f32)),
        w1=jnp.zeros((dim_p, hidden_p), bf16).at[:dim, :hidden].set(
            w1.astype(bf16)),
        b1=jnp.zeros((1, hidden_p), f32).at[0, :hidden].set(b1.astype(f32)),
        w2=jnp.zeros((hidden_p, dim_p), bf16).at[:hidden, :dim].set(
            w2.astype(bf16)),
        b2=jnp.zeros((1, dim_p), f32).at[0, :dim].set(b2.astype(f32)),
    )


# ---------------------------------------------------------------------------
# Generation-aware tiling / VMEM plan.
# ---------------------------------------------------------------------------
def _tpu_vmem_info():
    try:
        cap = int(pltpu.get_tpu_info().vmem_capacity_bytes)
    except Exception:
        cap = 64 << 20                      # conservative (v7x-sized) fallback
    dual_tc = cap <= (96 << 20)             # 64-MiB VMEM parts have 2 TCs/chip
    return cap, dual_tc


def _vmem_estimate(row_tile, dim_p, th, n_h_tiles, x_bytes, o_bytes):
    f32, bf16 = 4, 2
    w_buf = 1 if n_h_tiles == 1 else 2      # resident weights: single buffer
    est = 2 * row_tile * dim_p * x_bytes    # x tile (double-buffered)
    est += 2 * row_tile * dim_p * o_bytes   # out tile (double-buffered)
    est += 2 * 3 * dim_p * f32 + 2 * th * f32        # gamma/beta/b2 + b1
    est += w_buf * dim_p * th * bf16        # W1 tile(s), bf16
    est += w_buf * th * dim_p * bf16        # W2 tile(s), bf16
    est += row_tile * dim_p * (bf16 + f32)  # y (bf16) + acc (f32) scratch
    est += row_tile * th * (f32 + bf16)     # h f32 + its bf16 staging copy
    est += 2 * row_tile * dim_p * f32       # LN temporaries / headroom
    return est


def _plan(n_rows, dim_p, hidden_p, x_bytes, o_bytes):
    vmem_cap, dual_tc = _tpu_vmem_info()
    # Request ceiling: <= ~56 MiB on 64-MiB parts, <= 100 MiB on 128-MiB parts.
    ceiling = min(100 << 20, vmem_cap - (8 << 20))

    # Row tile: large on single-TC 128-MiB chips; 256 on dual-TC 64-MiB chips.
    row_tile = 256 if dual_tc else 512
    if n_rows < row_tile:
        row_tile = _round_up(n_rows, 8)
    if dual_tc:
        # Both TensorCores need work: >= 2 grid steps, and an even step count.
        if n_rows <= row_tile and row_tile > 8:
            row_tile = max(8, _round_up(_cdiv(n_rows, 2), 8))
        n_rows_p = _round_up(n_rows, 2 * row_tile)
    else:
        n_rows_p = _round_up(n_rows, row_tile)

    # Hidden tile: largest divisor of hidden_p (multiple of 128) that fits.
    th = 128
    for k in range(hidden_p // 128, 0, -1):
        cand = k * 128
        if hidden_p % cand:
            continue
        if _vmem_estimate(row_tile, dim_p, cand, hidden_p // cand,
                          x_bytes, o_bytes) + (6 << 20) <= ceiling:
            th = cand
            break
    n_h_tiles = hidden_p // th
    est = _vmem_estimate(row_tile, dim_p, th, n_h_tiles, x_bytes, o_bytes)
    vmem_limit = int(min(ceiling, max(32 << 20, est + (8 << 20))))
    return row_tile, n_rows_p, th, n_h_tiles, vmem_limit


# ---------------------------------------------------------------------------
# Forward wrapper.
# ---------------------------------------------------------------------------
def block_forward(x, params, *, use_tanh_gelu=True):
    """x: (batch, seq, dim) -> (batch, seq, dim). params: prepare_block_params."""
    batch, seq, dim = x.shape
    assert dim == params["dim"]
    dim_p, hidden_p = params["dim_p"], params["hidden_p"]
    n_rows = batch * seq

    row_tile, n_rows_p, th, n_h_tiles, vmem_limit = _plan(
        n_rows, dim_p, hidden_p, x.dtype.itemsize, x.dtype.itemsize)

    x2d = x.reshape(n_rows, dim)
    needs_pad = (dim != dim_p) or (n_rows != n_rows_p)
    if needs_pad:
        x_in = jnp.zeros((n_rows_p, dim_p), x.dtype).at[:n_rows, :dim].set(x2d)
    else:
        x_in = x2d                          # aligned: no extra HBM pass

    # Fully-resident weights (one hidden tile) only need a single VMEM buffer.
    w_kw = dict(pipeline_mode=pl.Buffered(1)) if n_h_tiles == 1 else {}

    kernel = functools.partial(block_kernel, inv_dim=1.0 / dim,
                               use_tanh_gelu=use_tanh_gelu)

    out = pl.pallas_call(
        kernel,
        out_shape=jax.ShapeDtypeStruct((n_rows_p, dim_p), x.dtype),
        grid_spec=pltpu.PrefetchScalarGridSpec(
            num_scalar_prefetch=0,
            grid=(n_rows_p // row_tile, n_h_tiles),
            in_specs=[
                pl.BlockSpec((row_tile, dim_p), lambda i, k: (i, 0)),   # x
                pl.BlockSpec((1, dim_p), lambda i, k: (0, 0)),          # gamma
                pl.BlockSpec((1, dim_p), lambda i, k: (0, 0)),          # beta
                pl.BlockSpec((dim_p, th), lambda i, k: (0, k), **w_kw),  # W1
                pl.BlockSpec((1, th), lambda i, k: (0, k)),             # b1
                pl.BlockSpec((th, dim_p), lambda i, k: (k, 0), **w_kw),  # W2
                pl.BlockSpec((1, dim_p), lambda i, k: (0, 0)),          # b2
            ],
            out_specs=pl.BlockSpec((row_tile, dim_p), lambda i, k: (i, 0)),
            scratch_shapes=[
                pltpu.VMEM((row_tile, dim_p), jnp.bfloat16),   # LN output y
                pltpu.VMEM((row_tile, dim_p), jnp.float32),    # MLP accumulator
            ],
        ),
        compiler_params=pltpu.CompilerParams(
            dimension_semantics=("parallel", "arbitrary"),
            vmem_limit_bytes=vmem_limit),
    )(x_in, params["gamma"], params["beta"], params["w1"], params["b1"],
      params["w2"], params["b2"])

    if needs_pad:
        out = out[:n_rows, :dim]
    return out.reshape(batch, seq, dim)


# ---------------------------------------------------------------------------
# Pure-JAX f32 reference (exact GELU, matches nn.GELU(approximate='none')).
# ---------------------------------------------------------------------------
def block_reference(x, gamma, beta, w1, b1, w2, b2):
    mean = x.mean(-1, keepdims=True)
    var = ((x - mean) ** 2).mean(-1, keepdims=True)
    y = (x - mean) * jax.lax.rsqrt(var + 1e-5) * gamma + beta
    h = jnp.einsum("bsd,dh->bsh", y, w1) + b1
    h = jax.nn.gelu(h, approximate=False)
    return x + jnp.einsum("bsh,hd->bsd", h, w2) + b2


if __name__ == "__main__":
    batch, seq, dim = 2, 8, 32
    expansion_factor = 4
    hidden = int(expansion_factor * dim)

    key = jax.random.PRNGKey(0)
    kx, kw1, kb1, kw2, kb2 = jax.random.split(key, 5)

    x = jax.random.normal(kx, (batch, seq, dim), dtype=jnp.float32)

    # Deterministic parameter init (PyTorch-style uniform bounds).
    bound1 = 1.0 / (dim ** 0.5)
    w1 = jax.random.uniform(kw1, (dim, hidden), jnp.float32, -bound1, bound1)
    b1 = jax.random.uniform(kb1, (hidden,), jnp.float32, -bound1, bound1)
    bound2 = 1.0 / (hidden ** 0.5)
    w2 = jax.random.uniform(kw2, (hidden, dim), jnp.float32, -bound2, bound2)
    b2 = jax.random.uniform(kb2, (dim,), jnp.float32, -bound2, bound2)
    gamma = jnp.ones((dim,), jnp.float32)
    beta = jnp.zeros((dim,), jnp.float32)

    # One-time parameter padding / bf16 cast (hoisted out of the call path).
    params = jax.tree_util.tree_map(jax.block_until_ready,
                                    prepare_block_params(gamma, beta, w1, b1,
                                                         w2, b2))

    out = block_forward(x, params)
    out = jax.block_until_ready(out)

    ref = block_reference(x, gamma, beta, w1, b1, w2, b2)
    assert out.shape == (batch, seq, dim)
    # bf16 MXU inputs (f32 accumulation) + tanh-form GELU -> loosened tolerance
    # vs. the exact-erf f32 reference.
    assert jnp.allclose(out, ref, rtol=5e-2, atol=5e-2), (
        float(jnp.max(jnp.abs(out - ref))))

    print("KERNEL_OK")
</pallas_src>

<mosaic_0001>
module attributes {stable_mosaic.version = 11 : i64} {
  func.func @block_kernel(%arg0: i32, %arg1: i32, %arg2: memref<8x128xf32, #tpu.memory_space<vmem>>, %arg3: memref<1x128xf32, #tpu.memory_space<vmem>>, %arg4: memref<1x128xf32, #tpu.memory_space<vmem>>, %arg5: memref<128x128xbf16, #tpu.memory_space<vmem>>, %arg6: memref<1x128xf32, #tpu.memory_space<vmem>>, %arg7: memref<128x128xbf16, #tpu.memory_space<vmem>>, %arg8: memref<1x128xf32, #tpu.memory_space<vmem>>, %arg9: memref<8x128xf32, #tpu.memory_space<vmem>>, %arg10: memref<8x128xbf16, #tpu.memory_space<vmem>>, %arg11: memref<8x128xf32, #tpu.memory_space<vmem>>) attributes {dimension_semantics = [#tpu.dimension_semantics<parallel>, #tpu.dimension_semantics<arbitrary>], iteration_bounds = array<i64: 2, 1>, scalar_prefetch = 0 : i64, scratch_operands = 2 : i64, tpu.core_type = #tpu.core_type<tc>, window_params = [{transform_indices = @transform_0, window_bounds = array<i64: 8, 128>}, {pipeline_mode = #tpu.pipeline_mode<synchronous>, transform_indices = @transform_1, window_bounds = array<i64: 1, 128>}, {pipeline_mode = #tpu.pipeline_mode<synchronous>, transform_indices = @transform_2, window_bounds = array<i64: 1, 128>}, {pipeline_mode = #tpu.pipeline_mode<synchronous>, transform_indices = @transform_3, window_bounds = array<i64: 128, 128>}, {transform_indices = @transform_4, window_bounds = array<i64: 1, 128>}, {pipeline_mode = #tpu.pipeline_mode<synchronous>, transform_indices = @transform_5, window_bounds = array<i64: 128, 128>}, {pipeline_mode = #tpu.pipeline_mode<synchronous>, transform_indices = @transform_6, window_bounds = array<i64: 1, 128>}, {transform_indices = @transform_7, window_bounds = array<i64: 8, 128>}]} {
    %c0_i32 = arith.constant 0 : i32
    %0 = arith.cmpi eq, %arg1, %c0_i32 : i32
    %1 = arith.extui %0 : i1 to i32
    %c0_i32_0 = arith.constant 0 : i32
    %2 = arith.cmpi ne, %1, %c0_i32_0 : i32
    scf.if %2 {
      %c0_19 = arith.constant 0 : index
      %c0_20 = arith.constant 0 : index
      %31 = vector.load %arg2[%c0_19, %c0_20] : memref<8x128xf32, #tpu.memory_space<vmem>>, vector<8x128xf32>
      %cst_21 = arith.constant dense<0.000000e+00> : vector<8xf32>
      %32 = vector.multi_reduction <add>, %31, %cst_21 [1] : vector<8x128xf32> to vector<8xf32>
      %33 = vector.shape_cast %32 : vector<8xf32> to vector<8x1xf32>
      %cst_22 = arith.constant 3.125000e-02 : f32
      %34 = vector.broadcast %cst_22 : f32 to vector<8x1xf32>
      %35 = arith.mulf %33, %34 : vector<8x1xf32>
      %36 = arith.mulf %31, %31 : vector<8x128xf32>
      %cst_23 = arith.constant dense<0.000000e+00> : vector<8xf32>
      %37 = vector.multi_reduction <add>, %36, %cst_23 [1] : vector<8x128xf32> to vector<8xf32>
      %38 = vector.shape_cast %37 : vector<8xf32> to vector<8x1xf32>
      %cst_24 = arith.constant 3.125000e-02 : f32
      %39 = vector.broadcast %cst_24 : f32 to vector<8x1xf32>
      %40 = arith.mulf %38, %39 : vector<8x1xf32>
      %41 = arith.mulf %35, %35 : vector<8x1xf32>
      %42 = arith.subf %40, %41 : vector<8x1xf32>
      %43 = vector.broadcast %35 : vector<8x1xf32> to vector<8x128xf32>
      %44 = arith.subf %31, %43 : vector<8x128xf32>
      %cst_25 = arith.constant 9.99999974E-6 : f32
      %45 = vector.broadcast %cst_25 : f32 to vector<8x1xf32>
      %46 = arith.addf %42, %45 : vector<8x1xf32>
      %47 = math.rsqrt %46 : vector<8x1xf32>
      %48 = vector.broadcast %47 : vector<8x1xf32> to vector<8x128xf32>
      %49 = arith.mulf %44, %48 : vector<8x128xf32>
      %c0_26 = arith.constant 0 : index
      %c0_27 = arith.constant 0 : index
      %50 = vector.load %arg3[%c0_26, %c0_27] : memref<1x128xf32, #tpu.memory_space<vmem>>, vector<1x128xf32>
      %51 = vector.broadcast %50 : vector<1x128xf32> to vector<8x128xf32>
      %52 = arith.mulf %49, %51 : vector<8x128xf32>
      %c0_28 = arith.constant 0 : index
      %c0_29 = arith.constant 0 : index
      %53 = vector.load %arg4[%c0_28, %c0_29] : memref<1x128xf32, #tpu.memory_space<vmem>>, vector<1x128xf32>
      %54 = vector.broadcast %53 : vector<1x128xf32> to vector<8x128xf32>
      %55 = arith.addf %52, %54 : vector<8x128xf32>
      %56 = arith.truncf %55 : vector<8x128xf32> to vector<8x128xbf16>
      %c0_30 = arith.constant 0 : index
      %c0_31 = arith.constant 0 : index
      %57 = vector.load %arg10[%c0_30, %c0_31] : memref<8x128xbf16, #tpu.memory_space<vmem>>, vector<8x128xbf16>
      tpu.vector_store %arg10[%c0_30, %c0_31], %56 {strides = array<i32>} : memref<8x128xbf16, #tpu.memory_space<vmem>>, vector<8x128xbf16>,
      %cst_32 = arith.constant 0.000000e+00 : f32
      %58 = vector.broadcast %cst_32 : f32 to vector<8x128xf32>
      %c0_33 = arith.constant 0 : index
      %c0_34 = arith.constant 0 : index
      %59 = vector.load %arg11[%c0_33, %c0_34] : memref<8x128xf32, #tpu.memory_space<vmem>>, vector<8x128xf32>
      tpu.vector_store %arg11[%c0_33, %c0_34], %58 {strides = array<i32>} : memref<8x128xf32, #tpu.memory_space<vmem>>, vector<8x128xf32>,
    } else {
    }
    %c0 = arith.constant 0 : index
    %c0_1 = arith.constant 0 : index
    %3 = vector.load %arg10[%c0, %c0_1] : memref<8x128xbf16, #tpu.memory_space<vmem>>, vector<8x128xbf16>
    %c0_2 = arith.constant 0 : index
    %c0_3 = arith.constant 0 : index
    %4 = vector.load %arg5[%c0_2, %c0_3] : memref<128x128xbf16, #tpu.memory_space<vmem>>, vector<128x128xbf16>
    %cst = arith.constant dense<0.000000e+00> : vector<8x128xf32>
    %5 = tpu.matmul %3, %4, %cst {dimension_numbers = #tpu.dot_dimension_numbers<[1], [0], [0], [1], [0, 0, 1, 1], [], []>} : vector<8x128xbf16>, vector<128x128xbf16>, vector<8x128xf32> -> vector<8x128xf32>
    %c0_4 = arith.constant 0 : index
    %c0_5 = arith.constant 0 : index
    %6 = vector.load %arg6[%c0_4, %c0_5] : memref<1x128xf32, #tpu.memory_space<vmem>>, vector<1x128xf32>
    %7 = vector.broadcast %6 : vector<1x128xf32> to vector<8x128xf32>
    %8 = arith.addf %5, %7 : vector<8x128xf32>
    %cst_6 = arith.constant 5.000000e-01 : f32
    %9 = vector.broadcast %cst_6 : f32 to vector<8x128xf32>
    %10 = arith.mulf %9, %8 : vector<8x128xf32>
    %cst_7 = arith.constant 4.471500e-02 : f32
    %11 = vector.broadcast %cst_7 : f32 to vector<8x128xf32>
    %12 = arith.mulf %11, %8 : vector<8x128xf32>
    %13 = arith.mulf %12, %8 : vector<8x128xf32>
    %14 = arith.mulf %13, %8 : vector<8x128xf32>
    %15 = arith.addf %8, %14 : vector<8x128xf32>
    %cst_8 = arith.constant 0.797884583 : f32
    %16 = vector.broadcast %cst_8 : f32 to vector<8x128xf32>
    %17 = arith.mulf %16, %15 : vector<8x128xf32>
    %18 = math.tanh %17 : vector<8x128xf32>
    %cst_9 = arith.constant 1.000000e+00 : f32
    %19 = vector.broadcast %cst_9 : f32 to vector<8x128xf32>
    %20 = arith.addf %19, %18 : vector<8x128xf32>
    %21 = arith.mulf %10, %20 : vector<8x128xf32>
    %c0_10 = arith.constant 0 : index
    %c0_11 = arith.constant 0 : index
    %22 = vector.load %arg11[%c0_10, %c0_11] : memref<8x128xf32, #tpu.memory_space<vmem>>, vector<8x128xf32>
    %23 = arith.truncf %21 : vector<8x128xf32> to vector<8x128xbf16>
    %c0_12 = arith.constant 0 : index
    %c0_13 = arith.constant 0 : index
    %24 = vector.load %arg7[%c0_12, %c0_13] : memref<128x128xbf16, #tpu.memory_space<vmem>>, vector<128x128xbf16>
    %cst_14 = arith.constant dense<0.000000e+00> : vector<8x128xf32>
    %25 = tpu.matmul %23, %24, %cst_14 {dimension_numbers = #tpu.dot_dimension_numbers<[1], [0], [0], [1], [0, 0, 1, 1], [], []>} : vector<8x128xbf16>, vector<128x128xbf16>, vector<8x128xf32> -> vector<8x128xf32>
    %26 = arith.addf %22, %25 : vector<8x128xf32>
    %c0_15 = arith.constant 0 : index
    %c0_16 = arith.constant 0 : index
    %27 = vector.load %arg11[%c0_15, %c0_16] : memref<8x128xf32, #tpu.memory_space<vmem>>, vector<8x128xf32>
    tpu.vector_store %arg11[%c0_15, %c0_16], %26 {strides = array<i32>} : memref<8x128xf32, #tpu.memory_space<vmem>>, vector<8x128xf32>,
    %c0_i32_17 = arith.constant 0 : i32
    %28 = arith.cmpi eq, %arg1, %c0_i32_17 : i32
    %29 = arith.extui %28 : i1 to i32
    %c0_i32_18 = arith.constant 0 : i32
    %30 = arith.cmpi ne, %29, %c0_i32_18 : i32
    scf.if %30 {
      %c0_19 = arith.constant 0 : index
      %c0_20 = arith.constant 0 : index
      %31 = vector.load %arg2[%c0_19, %c0_20] : memref<8x128xf32, #tpu.memory_space<vmem>>, vector<8x128xf32>
      %c0_21 = arith.constant 0 : index
      %c0_22 = arith.constant 0 : index
      %32 = vector.load %arg11[%c0_21, %c0_22] : memref<8x128xf32, #tpu.memory_space<vmem>>, vector<8x128xf32>
      %33 = arith.addf %31, %32 : vector<8x128xf32>
      %c0_23 = arith.constant 0 : index
      %c0_24 = arith.constant 0 : index
      %34 = vector.load %arg8[%c0_23, %c0_24] : memref<1x128xf32, #tpu.memory_space<vmem>>, vector<1x128xf32>
      %35 = vector.broadcast %34 : vector<1x128xf32> to vector<8x128xf32>
      %36 = arith.addf %33, %35 : vector<8x128xf32>
      %c0_25 = arith.constant 0 : index
      %c0_26 = arith.constant 0 : index
      %37 = vector.load %arg9[%c0_25, %c0_26] : memref<8x128xf32, #tpu.memory_space<vmem>>, vector<8x128xf32>
      tpu.vector_store %arg9[%c0_25, %c0_26], %36 {strides = array<i32>} : memref<8x128xf32, #tpu.memory_space<vmem>>, vector<8x128xf32>,
    } else {
    }
    return
  }
  func.func @transform_0(%arg0: i32, %arg1: i32) -> (i32, i32) {
    %c0_i32 = arith.constant 0 : i32
    %c0_i32_0 = arith.constant 0 : i32
    return %arg0, %c0_i32 : i32, i32
  }
  func.func @transform_1(%arg0: i32, %arg1: i32) -> (i32, i32) {
    %c0_i32 = arith.constant 0 : i32
    %c0_i32_0 = arith.constant 0 : i32
    %c0_i32_1 = arith.constant 0 : i32
    return %c0_i32, %c0_i32_0 : i32, i32
  }
  func.func @transform_2(%arg0: i32, %arg1: i32) -> (i32, i32) {
    %c0_i32 = arith.constant 0 : i32
    %c0_i32_0 = arith.constant 0 : i32
    %c0_i32_1 = arith.constant 0 : i32
    return %c0_i32, %c0_i32_0 : i32, i32
  }
  func.func @transform_3(%arg0: i32, %arg1: i32) -> (i32, i32) {
    %c0_i32 = arith.constant 0 : i32
    %c0_i32_0 = arith.constant 0 : i32
    return %c0_i32, %arg1 : i32, i32
  }
  func.func @transform_4(%arg0: i32, %arg1: i32) -> (i32, i32) {
    %c0_i32 = arith.constant 0 : i32
    %c0_i32_0 = arith.constant 0 : i32
    return %c0_i32, %arg1 : i32, i32
  }
  func.func @transform_5(%arg0: i32, %arg1: i32) -> (i32, i32) {
    %c0_i32 = arith.constant 0 : i32
    %c0_i32_0 = arith.constant 0 : i32
    return %arg1, %c0_i32 : i32, i32
  }
  func.func @transform_6(%arg0: i32, %arg1: i32) -> (i32, i32) {
    %c0_i32 = arith.constant 0 : i32
    %c0_i32_0 = arith.constant 0 : i32
    %c0_i32_1 = arith.constant 0 : i32
    return %c0_i32, %c0_i32_0 : i32, i32
  }
  func.func @transform_7(%arg0: i32, %arg1: i32) -> (i32, i32) {
    %c0_i32 = arith.constant 0 : i32
    %c0_i32_0 = arith.constant 0 : i32
    return %arg0, %c0_i32 : i32, i32
  }
}

</mosaic_0001>

<bundles_post_ra>
// kernel: tpu_custom_call.1
= control target key start
LH: loop header
LB: loop body
LE: loop exit
PB: predicated region body
PF: predicated region fallthrough
CT: control target
= control target key end

     0   :  { %12 = vsyncpa [#allocation5], 0  ;;  %s1490_s0 = inlined_call_operand.hbm [shape: f32[16,128], index: 0, kind: input, shape index: {}]   ;;  %s1491_s1 = inlined_call_operand.vmem [shape: f32[1,128], index: 1, kind: input, shape index: {}]   ;;  %s1492_s2 = inlined_call_operand.vmem [shape: f32[1,128], index: 2, kind: input, shape index: {}]   ;;  %s1493_s3 = inlined_call_operand.hbm [shape: bf16[128,128], index: 3, kind: input, shape index: {}]   ;;  %s1494_s4 = inlined_call_operand.vmem [shape: f32[1,128], index: 4, kind: input, shape index: {}]   ;;  %s1495_s5 = inlined_call_operand.hbm [shape: bf16[128,128], index: 5, kind: input, shape index: {}]   ;;  %s1496_s6 = inlined_call_operand.vmem [shape: f32[1,128], index: 6, kind: input, shape index: {}]   ;;  %s1497_s7 = inlined_call_operand.hbm [shape: f32[16,128], index: 7, kind: output, shape index: {}]  }
   0x1   :  { %14 = vsyncpa [#allocation5 + $0x1], 0 }
   0x2   :  { %15 = vsyncpa [#allocation8], 0 }
   0x3   :  { %16 = vsyncpa [#allocation6], 0 }
   0x4   :  { %18 = vsyncpa [#allocation6 + $0x1], 0  ;;  %s1199_s24 = smov 0   ;;  %s1201_s25 = smov 0  }
   0x5   :  { %s1203_s26 = smov 0   ;;  %s1205_s27 = smov 0  }
   0x6   :  { %s1207_s28 = smov 0   ;;  %s1209_s29 = smov 0  }
   0x7 LB: > { %1504 = sst [smem:[#allocation14_spill]] %s1129_s24  ;;  %s774_s30 = sadd.s32 4294967295, %s1149_s29   ;;  %s1149_s29 = sphi %s1209_s29, %s24_s29   ;;  %s1145_s28 = sphi %s1207_s28, %s1525_s28   ;;  %s1141_s27 = sphi %s1205_s27, %s1524_s27   ;;  %s1137_s26 = sphi %s1203_s26, %s1523_s26   ;;  %s1133_s25 = sphi %s1201_s25, %s1522_s25   ;;  %s1129_s24 = sphi %s1199_s24, %s1521_s24  }
   0x8   : > { %s775_s8 = sadd.s32 4294967294, %s1149_s29   ;;  %p56_p0 = scmp.ne.s32.totalorder %s1133_s25, %s1129_s24 }
   0x9   : > { %p1233_p1 = scmp.eq.s32.totalorder %s774_s30, 0  ;;  %p1237_p2 = scmp.eq.s32.totalorder %s774_s30, 1 }
   0xa   : > { %p227_p3 = scmp.eq.s32.totalorder %s775_s8, 1  ;;  %p776_p5 = scmp.ge.s32.totalorder %s1149_s29, 1 }
   0xb   : > { %s1505_s9 = scalar_select %p1233_p1, 1, 0 }
   0xc   : > { %p1243_p4 = por %p1233_p1, %p56_p0  ;;  %p1248_p6 = por %p227_p3, %p56_p0 }
   0xd   : > { %p234_p7 = scmp.lt.s32.totalorder %s1149_s29, 3  ;;  %s1151_s14 = smov [#allocation7]  }
   0xe   : > { %s1507_s11 = scalar_select %p1243_p4, 1, 0 }
   0xf   : > { %s1508_s12 = scalar_select %p1248_p6, 1, 0 }
  0x10   : > { %p1253_p8 = pnand %p776_p5, %p234_p7  ;;  %s254_s15 = sshll.u32 %s1151_s14, 4  ;;  %s1257_s15 = int_to_ptr.vmem [resolvable:$true] %s254_s15 }
  0x11   : > { %1509 = sst [smem:[#allocation15_spill]] %s1508_s12  ;;  %s1152_s17 = smov [#allocation9]  }
  0x12   : > { %p882_p9 = pneg %p1253_p8  ;;  %s276_s18 = sshll.u32 %s1152_s17, 4  ;;  %s1268_s18 = int_to_ptr.vmem [resolvable:$true] %s276_s18 }
  0x13   : > { %s977_s21 = scalar_lea.hbm %s1493_s3, 1024 }
  0x14   : > { %p1264_p11 = pnand %p882_p9, %p1233_p1  ;;  %p978_p12 = scmp.ne.s32.totalorder %s1493_s3, %s977_s21 }
  0x15   : > { %p984_p5 = scmp.lt.u32.totalorder %s977_s21, %s1493_s3 }
  0x16   : > { %p979_p13 = pneg %p1264_p11 }
  0x18   : > { %p980_p0 = pnand %p979_p13, %p978_p12 }
  0x1a   : > { %p981_p3 = pneg %p980_p0 }
  0x1c   : > { %p986_p7 = pnand %p984_p5, %p981_p3 }
  0x1e   : > { %989 = shalt.err (!%p986_p7)
}
  0x1f   : > { %s990_s14 = scalar_lea.vmem %s1257_s15, 1024  ;;  %p998_p1 = scmp.lt.s32.totalorder %s1257_s15, %s1257_s15 }
  0x20   : > { %p991_p9 = scmp.ne.s32.totalorder %s1257_s15, %s990_s14  ;;  %p999_p12 = scmp.lt.s32.totalorder %s990_s14, %s990_s14 }
  0x22   : > { %p993_p10 = pnand %p991_p9, %p979_p13  ;;  %p1000_p0 = por %p999_p12, %p998_p1 }
  0x24   : > { %p994_p6 = pneg %p993_p10 }
  0x26   : > { %p1001_p4 = pnand %p1000_p0, %p994_p6 }
  0x28   : > { %1004 = shalt.err (!%p1001_p4)
}
  0x29   : > { %s1153_s17 = smov 64   ;;  %s1154_s19 = smov 4  }
  0x2a   : > { %885 = dma.hbm_to_vmem [thread:$0]  (!%p1264_p11), %s1493_s3, 1024, %s1257_s15, [#allocation8], %s1153_s17, %s1153_s17, %s1154_s19  }
  0x2b   : > { %s1005_s30 = scalar_lea.hbm %s1495_s5, 1024 }
  0x2c   : > { %p1006_p1 = scmp.ne.s32.totalorder %s1495_s5, %s1005_s30  ;;  %p1012_p10 = scmp.lt.u32.totalorder %s1005_s30, %s1495_s5 }
  0x2e   : > { %p1008_p4 = pnand %p1006_p1, %p979_p13 }
  0x30   : > { %p1009_p6 = pneg %p1008_p4 }
  0x32   : > { %p1014_p3 = pnand %p1012_p10, %p1009_p6 }
  0x34   : > { %1017 = shalt.err (!%p1014_p3)
}
  0x35   : > { %s1018_s15 = scalar_lea.vmem %s1268_s18, 1024  ;;  %p1026_p12 = scmp.lt.s32.totalorder %s1268_s18, %s1268_s18 }
  0x36   : > { %p1019_p5 = scmp.ne.s32.totalorder %s1268_s18, %s1018_s15  ;;  %p1027_p0 = scmp.lt.s32.totalorder %s1018_s15, %s1018_s15 }
  0x38   : > { %p1021_p7 = pnand %p1019_p5, %p979_p13  ;;  %p1028_p1 = por %p1027_p0, %p1026_p12 }
  0x3a   : > { %p1022_p9 = pneg %p1021_p7 }
  0x3c   : > { %p1029_p4 = pnand %p1028_p1, %p1022_p9 }
  0x3e   : > { %1032 = shalt.err (!%p1029_p4)
}
  0x3f   : > { %888 = dma.hbm_to_vmem [thread:$0]  (!%p1264_p11), %s1495_s5, 1024, %s1268_s18, [#allocation8], %s1153_s17, %s1153_s17, %s1154_s19  }
  0x40   : > { %s36_s20 = sadd.s32 1, %s1145_s28  ;;  %s43_s21 = sadd.s32 1, %s1137_s26 }
  0x41   : > { %p38_p13 = scmp.ge.s32.totalorder %s36_s20, 2  ;;  %p50_p6 = scmp.ne.s32.totalorder %s1137_s26, %s1133_s25 }
  0x42   : > { %p51_p10 = scmp.eq.s32.totalorder %s1149_s29, 0  ;;  %p899_p3 = scmp.lt.s32.totalorder %s1149_s29, 2 }
  0x43   : > { %s1527_s20 = smov (%p38_p13, %s36_s20), 0  ;;  %p1332_p7 = por %p1237_p2, %p50_p6 }
  0x44   : > { %p52_p5 = por %p51_p10, %p50_p6  ;;  %s40_s22 = ssub.s32 %s1145_s28, %s1527_s20 }
  0x45   : > { %s1512_s16 = scalar_select %p1332_p7, 1, 0 }
  0x46   : > { %s293_s23 = sand.u32 1, %s1137_s26   ;;  %p41_p9 = scmp.eq.s32.totalorder %s40_s22, 0 }
  0x47   : > { %s781_s18 = sshll.u32 %s293_s23, 3  ;;  %s782_s17 = sshll.u32 %s1145_s28, 7 }
  0x48   : > { %s1341_s19 = scalar_select %p41_p9, %s1137_s26, %s43_s21  }
  0x49   : > { %s1346_s14 = scalar_lea.hbm %s1490_s0, %s782_s17  ;;  %s297_s10 = scalar_lea.vmem [#allocation4], %s781_s18 }
  0x4a   : > { %s304_s15 = sshll.u32 %s297_s10, 4  ;;  %p1350_p2 = pnand %p899_p3, %p52_p5  ;;  %s1354_s15 = int_to_ptr.vmem [resolvable:$true] %s304_s15 }
  0x4b   : > { %s294_s12 = scalar_lea.sflag [#allocation5], %s293_s23  ;;  %s1033_s21 = scalar_lea.hbm %s1346_s14, 128 }
  0x4c   : > { %p1034_p11 = scmp.ne.s32.totalorder %s1346_s14, %s1033_s21  ;;  %p1035_p12 = pneg %p1350_p2 }
  0x4d   : > { %s1038_s17 = scalar_lea.hbm %s1490_s0, 256  ;;  %p1039_p4 = scmp.lt.u32.totalorder %s1346_s14, %s1490_s0 }
  0x4e   : > { %p1036_p0 = pnand %p1035_p12, %p1034_p11  ;;  %p1040_p13 = scmp.lt.u32.totalorder %s1038_s17, %s1033_s21 }
  0x4f   : > { %p1042_p10 = scmp.lt.u32.totalorder %s1033_s21, %s1346_s14 }
  0x50   : > { %p1037_p1 = pneg %p1036_p0  ;;  %p1041_p6 = por %p1040_p13, %p1039_p4 }
  0x52   : > { %p1043_p3 = por %p1042_p10, %p1041_p6 }
  0x54   : > { %p1044_p5 = pnand %p1043_p3, %p1037_p1 }
  0x56   : > { %1047 = shalt.err (!%p1044_p5)
}
  0x57   : > { %s1048_s23 = scalar_lea.vmem %s1354_s15, 128  ;;  %s1155_s10 = smov [#allocation4]  }
  0x58   : > { %p1049_p9 = scmp.ne.s32.totalorder %s1354_s15, %s1048_s23  ;;  %s1053_s22 = sshll.u32 %s1155_s10, 4  ;;  %s1054_s22 = int_to_ptr.vmem [resolvable:$false] %s1053_s22 }
  0x59   : > { %s1055_s18 = scalar_lea.vmem %s1054_s22, 256  ;;  %p1056_p7 = scmp.lt.s32.totalorder %s1354_s15, %s1054_s22 }
  0x5a   : > { %p1051_p11 = pnand %p1049_p9, %p1035_p12  ;;  %p1057_p4 = scmp.lt.s32.totalorder %s1055_s18, %s1048_s23 }
  0x5c   : > { %p1052_p0 = pneg %p1051_p11  ;;  %p1058_p13 = por %p1057_p4, %p1056_p7 }
  0x5e   : > { %p1059_p6 = pnand %p1058_p13, %p1052_p0 }
  0x60   : > { %1062 = shalt.err (!%p1059_p6)
}
  0x61   : > { %892 = dma.hbm_to_vmem [thread:$0]  (!%p1350_p2), %s1346_s14, 128, %s1354_s15, %s294_s12  }
  0x62   : > { %313 = sbr.rel (%p1253_p8) target bundleno = 760 (0x2f8), region = 48  ;;  %s1384_s21 = sand.u32 (!%p1253_p8), 1, %s1133_s25  }
  0x63   : > { %s784_s17 = sshll.u32 (!%p1253_p8), %s1384_s21, 3  ;;  %s316_s30 = scalar_lea.sflag (!%p1253_p8), [#allocation5], %s1384_s21 }
  0x64   : > { %s319_s8 = scalar_lea.vmem (!%p1253_p8), [#allocation4], %s784_s17  ;;  %p1514_p7 = scmp.ne.s32.totalorder (!%p1253_p8), %s1507_s11, 0 }
  0x69   : > { %1116 = dma.done.wait (%p1514_p7), %s316_s30, 128  }
  0x6a   : > { %1118 = vsyncadd (%p1514_p7), %s316_s30, 4294967168  ;;  %p1515_p2 = scmp.ne.s32.totalorder %s1505_s9, 0 }
  0x6c   : > { %1120 = dma.done.wait (%p1515_p2), [#allocation8], 2048  }
  0x6d   : > { %1122 = vsyncadd (%p1515_p2), [#allocation8], 4294965248  ;;  %v1398_v0 = vld [vmem:[%s319_s8] sm:$0xff]  ;;  %v957_v2 = vld [vmem:[#allocation7] sm:$0xff]   ;;  %v1156_v3 = vmov 0.0   ;;  %vm1157_vm0 = vmmov 0  }
  0x6e   : > { %371 = vadd.xlane.f32.xlu0 %v1398_v0  ;;  %v374_v1 = vmul.f32 %v1398_v0, %v1398_v0  ;;  %830 = vmatprep.subr.bf16.mxu0 %v1156_v3  ;;  %v958_v4 = vld [vmem:[#allocation7 + $0x8] sm:$0xff]   ;;  %v959_v5 = vld [vmem:[#allocation7 + $0x10] sm:$0xff]   ;;  %v960_v6 = vld [vmem:[#allocation7 + $0x18] sm:$0xff]   ;;  %s809_s10 = sshll.u32 %s1141_s27, 7  ;;  %s360_s22 = scalar_lea.vmem [#allocation10], %s784_s17 }
  0x6f   : > { %850 = vmatprep.subr.bf16.mxu1 %v1156_v3  ;;  %831 = vmatpush3.bf16.msra.mxu0 %v957_v2  ;;  %v961_v7 = vld [vmem:[#allocation7 + $0x20] sm:$0xff]   ;;  %v962_v8 = vld [vmem:[#allocation7 + $0x28] sm:$0xff]   ;;  %v963_v9 = vld [vmem:[#allocation7 + $0x30] sm:$0xff]   ;;  %s661_s18 = sshll.u32 %s360_s22, 4  ;;  %s1441_s9 = scalar_lea.hbm %s1497_s7, %s809_s10  ;;  %s1443_s18 = int_to_ptr.vmem [resolvable:$true] %s661_s18 }
  0x70   : > { %832 = vmatprep.subr.bf16.mxu0 %v1156_v3  ;;  %v964_v10 = vld [vmem:[#allocation7 + $0x38] sm:$0xff]   ;;  %846 = vmatprep.mubr.msk.bf16.mxu0 %vm1157_vm0, %v1156_v3  ;;  %v965_v11 = vld [vmem:[#allocation9] sm:$0xff]   ;;  %v788_v21 = vld [vmem:[%s1491_s1] ss:$0 sm:$0xff]  ;;  %s648_s27 = scalar_lea.sflag [#allocation6], %s1384_s21  ;;  %s1063_s17 = scalar_lea.vmem %s1443_s18, 128 }
  0x71   : > { %866 = vmatprep.mubr.msk.bf16.mxu1 %vm1157_vm0, %v1156_v3  ;;  %851 = vmatpush3.bf16.msra.mxu1 %v965_v11  ;;  %v789_v23 = vld [vmem:[%s1492_s2] ss:$0 sm:$0xff]  ;;  %v967_v29 = vld [vmem:[#allocation9 + $0x10] sm:$0xff]   ;;  %v968_v30 = vld [vmem:[#allocation9 + $0x18] sm:$0xff]   ;;  %p1064_p8 = scmp.ne.s32.totalorder %s1443_s18, %s1063_s17  ;;  %p1516_p12 = scmp.ne.s32.totalorder %s1512_s16, 0 }
  0x72   : > { %375 = vadd.xlane.f32.xlu0 %v374_v1  ;;  %852 = vmatprep.subr.bf16.mxu1 %v1156_v3  ;;  %v966_v28 = vld [vmem:[#allocation9 + $0x8] sm:$0xff]   ;;  %v969_v31 = vld [vmem:[#allocation9 + $0x20] sm:$0xff]   ;;  %v971_v33 = vld [vmem:[#allocation9 + $0x30] sm:$0xff]   ;;  %s1158_s11 = smov [#allocation10]  }
  0x73   : > { %833 = vmatpush3.bf16.msra.mxu0 %v958_v4  ;;  %v970_v32 = vld [vmem:[#allocation9 + $0x28] sm:$0xff]   ;;  %v972_v34 = vld [vmem:[#allocation9 + $0x38] sm:$0xff]   ;;  %p1065_p1 = pnand %p1064_p8, %p1516_p12  ;;  %s1067_s13 = sshll.u32 %s1158_s11, 4  ;;  %s1068_s13 = int_to_ptr.vmem [resolvable:$false] %s1067_s13 }
  0x74   : > { %834 = vmatprep.subr.bf16.mxu0 %v1156_v3  ;;  %v790_v35 = vld [vmem:[%s1494_s4] ss:$0 sm:$0xff]  ;;  %s1069_s14 = scalar_lea.vmem %s1068_s13, 256  ;;  %p1070_p3 = scmp.lt.s32.totalorder %s1443_s18, %s1068_s13 }
  0x75   : > { %853 = vmatpush3.bf16.msra.mxu1 %v966_v28  ;;  %v807_v52 = vld [vmem:[%s1496_s6] ss:$0 sm:$0xff]  ;;  %p1066_p10 = pneg %p1065_p1  ;;  %p1071_p5 = scmp.lt.s32.totalorder %s1069_s14, %s1063_s17 }
  0x76   : > { %854 = vmatprep.subr.bf16.mxu1 %v1156_v3 }
  0x77   : > { %835 = vmatpush3.bf16.msra.mxu0 %v959_v5  ;;  %p1072_p9 = por %p1071_p5, %p1070_p3 }
  0x78   : > { %836 = vmatprep.subr.bf16.mxu0 %v1156_v3 }
  0x79   : > { %855 = vmatpush3.bf16.msra.mxu1 %v967_v29  ;;  %p1073_p11 = pnand %p1072_p9, %p1066_p10 }
  0x7a   : > { %856 = vmatprep.subr.bf16.mxu1 %v1156_v3 }
  0x7b   : > { %837 = vmatpush3.bf16.msra.mxu0 %v960_v6 }
  0x7c   : > { %838 = vmatprep.subr.bf16.mxu0 %v1156_v3 }
  0x7d   : > { %857 = vmatpush3.bf16.msra.mxu1 %v968_v30 }
  0x7e   : > { %858 = vmatprep.subr.bf16.mxu1 %v1156_v3 }
  0x7f   : > { %839 = vmatpush3.bf16.msra.mxu0 %v961_v7 }
  0x80   : > { %840 = vmatprep.subr.bf16.mxu0 %v1156_v3 }
  0x81   : > { %859 = vmatpush3.bf16.msra.mxu1 %v969_v31 }
  0x82   : > { %860 = vmatprep.subr.bf16.mxu1 %v1156_v3 }
  0x83   : > { %841 = vmatpush3.bf16.msra.mxu0 %v962_v8 }
  0x84   : > { %842 = vmatprep.subr.bf16.mxu0 %v1156_v3 }
  0x85   : > { %861 = vmatpush3.bf16.msra.mxu1 %v970_v32 }
  0x86   : > { %862 = vmatprep.subr.bf16.mxu1 %v1156_v3 }
  0x87   : > { %843 = vmatpush3.bf16.msra.mxu0 %v963_v9 }
  0x88   : > { %844 = vmatprep.subr.bf16.mxu0 %v1156_v3 }
  0x89   : > { %863 = vmatpush3.bf16.msra.mxu1 %v971_v33 }
  0x8a   : > { %864 = vmatprep.subr.bf16.mxu1 %v1156_v3 }
  0x8b   : > { %845 = vmatpush3.bf16.msra.mxu0 %v964_v10 }
  0x8d   : > { %865 = vmatpush3.bf16.msra.mxu1 %v972_v34 }
  0xfb   : > { %v372_v12 = vpop.xlane.xlu0 %371 }
  0xfc   : > { %v373_v13 = vmul.f32 0.03125, %v372_v12 }
  0xfe   : > { %v378_v15 = vmul.f32 %v373_v13, %v373_v13  ;;  %v380_v19 = vsub.f32 %v1398_v0, %v373_v13 }
  0xff   : > { %v376_v14 = vpop.xlane.xlu0 %375 }
 0x100   : > { %v377_v16 = vmul.f32 0.03125, %v376_v14 }
 0x102   : > { %v379_v17 = vsub.f32 %v377_v16, %v378_v15 }
 0x104   : > { %v381_v18 = vadd.f32 1e-05, %v379_v17 }
 0x106   : > { %973 = vrsqrt.f32 %v381_v18 }
 0x110   : > { %v974_v20 = vpop.eup %973 }
 0x111   : > { %v383_v22 = vmul.f32 %v974_v20, %v380_v19 }
 0x113   : > { %v391_v24 = vmul.f32 %v788_v21, %v383_v22 }
 0x115   : > { %v399_v25 = vadd.f32 %v789_v23, %v391_v24 }
 0x117   : > { %v400_v26 = vpack.c.bf16 %v399_v25, %v399_v25 }
 0x119   : > { %401 = vst [vmem:[#allocation2] sm:$0xf] %v400_v26 }
 0x120   : > { %v403_v27 = vld [vmem:[#allocation2] sm:$0xf] }
 0x121   : > { %847 = vmatmul.mubr.bf16.vlgmr.msra.gmra.mrb[0].mxu0 %v403_v27 }
 0x1f4   : > { %v509_v36 = vpop.f32.mrb[0].mxu0 }
 0x1f5   : > { %v510_v37 = vadd.f32 %v790_v35, %v509_v36  ;;  %v848_v38 = vpop.f32.mrb[1].mxu0 }
 0x1f6   : > { %v512_v39 = vpop.f32.mrb[2].mxu0 }
 0x1f7   : > { %v516_v40 = vmul.f32 0.044715, %v510_v37  ;;  %v849_v41 = vpop.f32.mrb[3].mxu0  ;;  %v515_v47 = vmul.f32 0.5, %v510_v37 }
 0x1f9   : > { %v517_v42 = vmul.f32 %v516_v40, %v510_v37 }
 0x1fb   : > { %v518_v43 = vmul.f32 %v517_v42, %v510_v37 }
 0x1fd   : > { %v519_v44 = vadd.f32 %v518_v43, %v510_v37 }
 0x1ff   : > { %v520_v45 = vmul.f32 0.7978846, %v519_v44 }
 0x201   : > { %975 = vtanh.f32 %v520_v45 }
 0x20b   : > { %v976_v46 = vpop.eup %975 }
 0x20c   : > { %v522_v48 = vadd.f32 1.0, %v976_v46 }
 0x20e   : > { %v523_v49 = vmul.f32 %v522_v48, %v515_v47 }
 0x210   : > { %v525_v50 = vpack.c.bf16 %v523_v49, %v523_v49 }
 0x212   : > { %867 = vmatmul.mubr.bf16.vlgmr.msra.gmra.mrb[0].mxu1 %v525_v50 }
 0x2e5   : > { %v624_v51 = vpop.f32.mrb[0].mxu1 }
 0x2e6   : > { %v637_v53 = vadd.f32 %v624_v51, %v1398_v0  ;;  %v868_v54 = vpop.f32.mrb[1].mxu1 }
 0x2e7   : > { %v627_v55 = vpop.f32.mrb[2].mxu1 }
 0x2e8   : > { %v645_v56 = vadd.f32 %v807_v52, %v637_v53  ;;  %v869_v57 = vpop.f32.mrb[3].mxu1 }
 0x2ea   : > { %646 = vst [vmem:[%s360_s22] sm:$0xff] %v645_v56 }
 0x2eb   : > { %1076 = shalt.err (!%p1073_p11)
}
 0x2ec   : > { %s1077_s21 = scalar_lea.hbm %s1441_s9, 128  ;;  %s1081_s12 = scalar_lea.hbm %s1497_s7, 256 }
 0x2ed   : > { %p1078_p0 = scmp.ne.s32.totalorder %s1441_s9, %s1077_s21  ;;  %p1082_p6 = scmp.lt.u32.totalorder %s1441_s9, %s1497_s7 }
 0x2ee   : > { %p1083_p7 = scmp.lt.u32.totalorder %s1081_s12, %s1077_s21  ;;  %p1085_p8 = scmp.lt.u32.totalorder %s1077_s21, %s1441_s9 }
 0x2ef   : > { %p1079_p4 = pnand %p1078_p0, %p1516_p12 }
 0x2f0   : > { %p1084_p2 = por %p1083_p7, %p1082_p6 }
 0x2f1   : > { %p1080_p13 = pneg %p1079_p4 }
 0x2f2   : > { %p1086_p1 = por %p1085_p8, %p1084_p2 }
 0x2f4   : > { %p1087_p10 = pnand %p1086_p1, %p1080_p13 }
 0x2f6   : > { %1090 = shalt.err (!%p1087_p10)
}
 0x2f7   : > { %880 = dma.vmem_to_hbm [thread:$0]  (%p1516_p12), %s1443_s18, 128, %s1441_s9, %s648_s27  }
 0x2f8 PF: > { %s1517_s22 = sld [smem:[#allocation14_spill]]  ;;  %s1518_s30 = sld [smem:[#allocation15_spill]] }
 0x2f9   : > { %p1520_p5 = scmp.ge.s32.totalorder %s1149_s29, 2 }
 0x2fe   : > { %s673_s8 = sand.u32 1, %s1517_s22   ;;  %p1519_p3 = scmp.ne.s32.totalorder %s1518_s30, 0 }
 0x2ff   : > { %s674_s17 = scalar_lea.sflag [#allocation6], %s673_s8 }
 0x300   : > { %p894_p9 = pnand %p1520_p5, %p1519_p3 }
 0x302   : > { %1124 = dma.done.wait (!%p894_p9), %s674_s17, 128  }
 0x303   : > { %1126 = vsyncadd (!%p894_p9), %s674_s17, 4294967168  ;;  %s24_s29 = sadd.s32 1, %s1149_s29   ;;  %s1521_s24 = smov %s1133_s25 }
 0x304   : > { %p21_p11 = scmp.ge.s32.totalorder %s24_s29, 4   ;;  %s1522_s25 = smov %s1137_s26 }
 0x305   : > { %s1523_s26 = smov %s1341_s19  ;;  %s1524_s27 = smov %s1145_s28 }
 0x306   : > { %s1525_s28 = smov %s1527_s20  ;;  %23 = sbr.rel (!%p21_p11) target bundleno = 7 (0x7), region = 114 }
 0x30d   :  { %679 = vsyncpa [#allocation5], 1 }
 0x30e   :  { %681 = vsyncpa [#allocation5 + $0x1], 1 }
 0x30f   :  { %682 = vsyncpa [#allocation8], 1 }
 0x310   :  { %683 = vsyncpa [#allocation6], 1 }
 0x311   :  { %685 = vsyncpa [#allocation6 + $0x1], 1 }

</bundles_post_ra>
